<compile_context>
chip_gen: v6e
topology: v6e:2x2x1
jax: 0.10.0
libtpu: 0.0.40
codegen_flags: <defaults>
</compile_context>

<pallas_src>
import functools
import math

import jax
import jax.numpy as jnp
from jax import lax
from jax.experimental import pallas as pl
from jax.experimental.pallas import tpu as pltpu

# Keep f32 matmuls at f32 accuracy on TPU for both the XLA reference and the
# in-kernel dots (the config is picked up at trace time by lax.dot_general).
jax.config.update("jax_default_matmul_precision", "highest")


# ---------------------------------------------------------------------------
# Kernel 1: fused QKV projection  (x2d [M,D] @ w_qkv_t [D,3D] -> q,k,v [M,D])
# ---------------------------------------------------------------------------
def _qkv_project_kernel(x_ref, w_ref, q_ref, k_ref, v_ref, *, d_model):
    qkv = jnp.dot(x_ref[...], w_ref[...], preferred_element_type=jnp.float32)
    q_ref[...] = qkv[:, :d_model].astype(q_ref.dtype)          # scale pre-folded
    k_ref[...] = qkv[:, d_model:2 * d_model].astype(k_ref.dtype)
    v_ref[...] = qkv[:, 2 * d_model:].astype(v_ref.dtype)


# ---------------------------------------------------------------------------
# Kernel 2: flash attention (online softmax over kv tiles) + output projection
# ---------------------------------------------------------------------------
def _flash_attn_kernel(q_ref, k_ref, v_ref, wout_ref, o_ref,
                       m_sc, l_sc, acc_sc, o_sc, *, num_heads, head_dim):
    # q_ref: (1, tq, D)   k_ref/v_ref: (1, tkv, D)   wout_ref: (D, D)
    # o_ref: (1, tq, D)
    # m_sc/l_sc: (H, tq, 1) f32   acc_sc: (H, tq, d) f32   o_sc: (tq, D) cdt
    ki = pl.program_id(2)
    nk = pl.num_programs(2)
    cdt = q_ref.dtype

    @pl.when(ki == 0)
    def _init():
        m_sc[...] = jnp.full_like(m_sc, -jnp.inf)
        l_sc[...] = jnp.zeros_like(l_sc)
        acc_sc[...] = jnp.zeros_like(acc_sc)

    # Per-head online softmax (flash pattern).  Head slices are loaded straight
    # from the block refs, so only (tile, d) slices are live per iteration.
    for h in range(num_heads):
        lo = h * head_dim
        qh = q_ref[0, :, lo:lo + head_dim]                     # (tq,  d)
        kh = k_ref[0, :, lo:lo + head_dim]                     # (tkv, d)
        vh = v_ref[0, :, lo:lo + head_dim]                     # (tkv, d)
        s = lax.dot_general(qh, kh, (((1,), (1,)), ((), ())),
                            preferred_element_type=jnp.float32)  # (tq, tkv)
        m_prev = m_sc[h]                                       # (tq, 1)
        m_new = jnp.maximum(m_prev, jnp.max(s, axis=-1, keepdims=True))
        alpha = jnp.exp(m_prev - m_new)
        p = jnp.exp(s - m_new)                                 # (tq, tkv) f32
        l_sc[h] = alpha * l_sc[h] + jnp.sum(p, axis=-1, keepdims=True)
        acc_sc[h] = alpha * acc_sc[h] + jnp.dot(
            p.astype(cdt), vh, preferred_element_type=jnp.float32)
        m_sc[h] = m_new

    @pl.when(ki == nk - 1)
    def _finalize():
        # Normalize heads into a lane-dense (tq, D) scratch, then ONE full-K
        # matmul with W_out (concat_h(attn_h) @ Wout == [attn_0..attn_H] @ Wout).
        for h in range(num_heads):
            lo = h * head_dim
            lsum = l_sc[h]
            inv = pl.reciprocal(lsum, approx=True)   # EUP slot
            inv = inv * (2.0 - lsum * inv)           # one Newton step -> full precision
            o_sc[:, lo:lo + head_dim] = (acc_sc[h] * inv).astype(o_sc.dtype)
        out = jnp.dot(o_sc[...], wout_ref[...], preferred_element_type=jnp.float32)
        o_ref[0] = out.astype(o_ref.dtype)


# ---------------------------------------------------------------------------
# Helpers
# ---------------------------------------------------------------------------
def _ternarize(w):
    # TernarySTE.forward: threshold = 0.7*mean(|w|); (|w|>thr)*sign(w)
    thr = jnp.mean(jnp.abs(w)) * 0.7
    return (jnp.abs(w) > thr).astype(w.dtype) * jnp.sign(w)


def _pick_tile(n, target):
    """Largest divisor of n that is <= target, preferring MXU-aligned sizes."""
    if n <= target:
        return n
    for align in (256, 128, 8, 1):
        start = (target // align) * align
        for t in range(start, 0, -align):
            if t > 0 and n % t == 0:
                return t
    return n


def _vmem_cap_bytes():
    try:
        return int(pltpu.get_tpu_info().vmem_capacity_bytes)
    except Exception:
        return 64 * 1024 * 1024   # conservative (v7x per-TC VMEM)


def _vmem_limit(est_bytes):
    cap = _vmem_cap_bytes()
    hi = int(cap * 0.875)          # headroom for Mosaic-internal scratch
    return int(min(max(2 * est_bytes, 32 * 1024 * 1024), hi))


# ---------------------------------------------------------------------------
# Wrapper
# ---------------------------------------------------------------------------
def gated_attention(x, w_qkv, w_out, *, num_heads, use_ternary=False,
                    q_tile=256, kv_tile=256, row_tile=512):
    """x: [B,N,D]; w_qkv: [3D,D] (PyTorch layout); w_out: [D,D] (PyTorch layout)."""
    B, N, D = x.shape
    assert D % num_heads == 0
    head_dim = D // num_heads
    scale = 1.0 / math.sqrt(head_dim)

    if use_ternary:
        w_qkv = _ternarize(w_qkv)
        w_out = _ternarize(w_out)

    # Right-multiply layout; fold the softmax scale into the Q weight columns.
    w_qkv_t = jnp.concatenate(
        [w_qkv[:D, :].T * scale, w_qkv[D:2 * D, :].T, w_qkv[2 * D:, :].T],
        axis=1)                                                     # [D, 3D]
    wout_t = w_out.T                                                # [D, D]

    isz = jnp.dtype(x.dtype).itemsize
    lane = 128

    # ---- Kernel 1: QKV projection over flattened rows -------------------
    M = B * N
    x2d = x.reshape(M, D)
    tm = _pick_tile(M, row_tile)
    est_proj = 2 * (tm * D + D * 3 * D + 3 * tm * D) * isz
    q2d, k2d, v2d = pl.pallas_call(
        functools.partial(_qkv_project_kernel, d_model=D),
        out_shape=(jax.ShapeDtypeStruct((M, D), x.dtype),
                   jax.ShapeDtypeStruct((M, D), x.dtype),
                   jax.ShapeDtypeStruct((M, D), x.dtype)),
        grid_spec=pltpu.PrefetchScalarGridSpec(
            num_scalar_prefetch=0,
            grid=(M // tm,),
            in_specs=[pl.BlockSpec((tm, D), lambda i: (i, 0)),
                      pl.BlockSpec((D, 3 * D), lambda i: (0, 0))],
            out_specs=[pl.BlockSpec((tm, D), lambda i: (i, 0)),
                       pl.BlockSpec((tm, D), lambda i: (i, 0)),
                       pl.BlockSpec((tm, D), lambda i: (i, 0))]),
        compiler_params=pltpu.CompilerParams(
            dimension_semantics=("parallel",),
            vmem_limit_bytes=_vmem_limit(est_proj)),
    )(x2d, w_qkv_t)
    q = q2d.reshape(B, N, D)
    k = k2d.reshape(B, N, D)
    v = v2d.reshape(B, N, D)

    # ---- Kernel 2: flash attention + fused output projection ------------
    tq = _pick_tile(N, q_tile)
    tkv = _pick_tile(N, kv_tile)
    nq, nk = N // tq, N // tkv
    est_attn = (2 * (2 * tq + 2 * tkv) * D * isz            # dbl-buffered q,k,v,out tiles
                + 2 * D * D * isz                           # wout (double-buffered)
                + num_heads * tq * 2 * lane * 4             # m, l scratch (lane-padded)
                + num_heads * tq * max(head_dim, lane) * 4  # acc scratch
                + tq * D * isz)                             # o_sc scratch
    kernel = functools.partial(_flash_attn_kernel,
                               num_heads=num_heads, head_dim=head_dim)
    return pl.pallas_call(
        kernel,
        out_shape=jax.ShapeDtypeStruct((B, N, D), x.dtype),
        grid_spec=pltpu.PrefetchScalarGridSpec(
            num_scalar_prefetch=0,
            grid=(B, nq, nk),
            in_specs=[
                pl.BlockSpec((1, tq, D), lambda b, qi, ki: (b, qi, 0)),   # Q tile
                pl.BlockSpec((1, tkv, D), lambda b, qi, ki: (b, ki, 0)),  # K tile
                pl.BlockSpec((1, tkv, D), lambda b, qi, ki: (b, ki, 0)),  # V tile
                pl.BlockSpec((D, D), lambda b, qi, ki: (0, 0)),           # W_out
            ],
            out_specs=pl.BlockSpec((1, tq, D), lambda b, qi, ki: (b, qi, 0)),
            scratch_shapes=[
                pltpu.VMEM((num_heads, tq, 1), jnp.float32),          # running max
                pltpu.VMEM((num_heads, tq, 1), jnp.float32),          # running sum
                pltpu.VMEM((num_heads, tq, head_dim), jnp.float32),   # per-head acc
                pltpu.VMEM((tq, D), x.dtype),                         # normalized out
            ]),
        compiler_params=pltpu.CompilerParams(
            dimension_semantics=("parallel", "parallel", "arbitrary"),
            vmem_limit_bytes=_vmem_limit(est_attn)),
    )(q, k, v, wout_t)


# ---------------------------------------------------------------------------
# Pure-JAX reference mirroring the PyTorch forward
# ---------------------------------------------------------------------------
def _reference(x, w_qkv, w_out, *, num_heads, use_ternary=False):
    B, N, D = x.shape
    d = D // num_heads
    if use_ternary:
        w_qkv = _ternarize(w_qkv)
        w_out = _ternarize(w_out)
    hp = jax.lax.Precision.HIGHEST
    qkv = jnp.matmul(x, w_qkv.T, precision=hp)                 # [B, N, 3D]
    q, k, v = jnp.split(qkv, 3, axis=-1)

    def to_heads(t):
        return t.reshape(B, N, num_heads, d).transpose(0, 2, 1, 3)   # b h n d

    q, k, v = map(to_heads, (q, k, v))
    s = jnp.einsum("bhnd,bhmd->bhnm", q, k, precision=hp) / math.sqrt(d)
    p = jax.nn.softmax(s, axis=-1)
    o = jnp.einsum("bhnm,bhmd->bhnd", p, v, precision=hp)
    o = o.transpose(0, 2, 1, 3).reshape(B, N, D)
    return jnp.matmul(o, w_out.T, precision=hp)


if __name__ == "__main__":
    def run_case(B, N, D, H, *, use_ternary, q_tile=256, kv_tile=256):
        key = jax.random.PRNGKey(0)
        kx, kq, ko = jax.random.split(key, 3)
        x = jax.random.normal(kx, (B, N, D), dtype=jnp.float32)
        # kaiming_uniform(a=sqrt(5)) on [out,in] -> U(-1/sqrt(fan_in), 1/sqrt(fan_in))
        bound = 1.0 / math.sqrt(D)
        w_qkv = jax.random.uniform(kq, (3 * D, D), minval=-bound, maxval=bound,
                                   dtype=jnp.float32)
        w_out = jax.random.uniform(ko, (D, D), minval=-bound, maxval=bound,
                                   dtype=jnp.float32)
        out = gated_attention(x, w_qkv, w_out, num_heads=H, use_ternary=use_ternary,
                              q_tile=q_tile, kv_tile=kv_tile)
        out = jax.block_until_ready(out)
        ref = _reference(x, w_qkv, w_out, num_heads=H, use_ternary=use_ternary)
        assert out.shape == (B, N, D)
        err = float(jnp.max(jnp.abs(out - ref)))
        denom = float(jnp.max(jnp.abs(ref))) + 1e-6
        assert err / denom < 2e-2, (
            f"mismatch vs reference (B={B}, N={N}, ternary={use_ternary}): "
            f"max_abs_err={err:.3e}, rel={err / denom:.3e}")

    # Module-scale shapes: batch=2, seq=8, dim=32, heads=4, ternary weights.
    run_case(2, 8, 32, 4, use_ternary=True)
    # Exercise the flash q/kv tiling + online-softmax accumulation (grid 2x2x2).
    run_case(2, 16, 32, 4, use_ternary=False, q_tile=8, kv_tile=8)

    print("KERNEL_OK")
</pallas_src>

<mosaic_0001>
module attributes {stable_mosaic.version = 11 : i64} {
  func.func @_qkv_project_kernel(%arg0: i32, %arg1: memref<16x32xf32, #tpu.memory_space<vmem>>, %arg2: memref<32x96xf32, #tpu.memory_space<vmem>>, %arg3: memref<16x32xf32, #tpu.memory_space<vmem>>, %arg4: memref<16x32xf32, #tpu.memory_space<vmem>>, %arg5: memref<16x32xf32, #tpu.memory_space<vmem>>) attributes {dimension_semantics = [#tpu.dimension_semantics<parallel>], iteration_bounds = array<i64: 1>, scalar_prefetch = 0 : i64, scratch_operands = 0 : i64, tpu.core_type = #tpu.core_type<tc>, window_params = [{transform_indices = @transform_0, window_bounds = array<i64: 16, 32>}, {pipeline_mode = #tpu.pipeline_mode<synchronous>, transform_indices = @transform_1, window_bounds = array<i64: 32, 96>}, {transform_indices = @transform_2, window_bounds = array<i64: 16, 32>}, {transform_indices = @transform_3, window_bounds = array<i64: 16, 32>}, {transform_indices = @transform_4, window_bounds = array<i64: 16, 32>}]} {
    %c0 = arith.constant 0 : index
    %c0_0 = arith.constant 0 : index
    %0 = vector.load %arg1[%c0, %c0_0] : memref<16x32xf32, #tpu.memory_space<vmem>>, vector<16x32xf32>
    %c0_1 = arith.constant 0 : index
    %c0_2 = arith.constant 0 : index
    %1 = vector.load %arg2[%c0_1, %c0_2] : memref<32x96xf32, #tpu.memory_space<vmem>>, vector<32x96xf32>
    %cst = arith.constant dense<0.000000e+00> : vector<16x96xf32>
    %2 = tpu.matmul %0, %1, %cst {dimension_numbers = #tpu.dot_dimension_numbers<[1], [0], [0], [1], [0, 0, 1, 1], [], []>, precision = #tpu.contract_precision<fp32>} : vector<16x32xf32>, vector<32x96xf32>, vector<16x96xf32> -> vector<16x96xf32>
    %3 = vector.extract_strided_slice %2 {offsets = [0, 0], sizes = [16, 32], strides = [1, 1]} : vector<16x96xf32> to vector<16x32xf32>
    %c0_3 = arith.constant 0 : index
    %c0_4 = arith.constant 0 : index
    %4 = vector.load %arg3[%c0_3, %c0_4] : memref<16x32xf32, #tpu.memory_space<vmem>>, vector<16x32xf32>
    tpu.vector_store %arg3[%c0_3, %c0_4], %3 {strides = array<i32>} : memref<16x32xf32, #tpu.memory_space<vmem>>, vector<16x32xf32>,
    %5 = vector.extract_strided_slice %2 {offsets = [0, 32], sizes = [16, 32], strides = [1, 1]} : vector<16x96xf32> to vector<16x32xf32>
    %c0_5 = arith.constant 0 : index
    %c0_6 = arith.constant 0 : index
    %6 = vector.load %arg4[%c0_5, %c0_6] : memref<16x32xf32, #tpu.memory_space<vmem>>, vector<16x32xf32>
    tpu.vector_store %arg4[%c0_5, %c0_6], %5 {strides = array<i32>} : memref<16x32xf32, #tpu.memory_space<vmem>>, vector<16x32xf32>,
    %7 = vector.extract_strided_slice %2 {offsets = [0, 64], sizes = [16, 32], strides = [1, 1]} : vector<16x96xf32> to vector<16x32xf32>
    %c0_7 = arith.constant 0 : index
    %c0_8 = arith.constant 0 : index
    %8 = vector.load %arg5[%c0_7, %c0_8] : memref<16x32xf32, #tpu.memory_space<vmem>>, vector<16x32xf32>
    tpu.vector_store %arg5[%c0_7, %c0_8], %7 {strides = array<i32>} : memref<16x32xf32, #tpu.memory_space<vmem>>, vector<16x32xf32>,
    return
  }
  func.func @transform_0(%arg0: i32) -> (i32, i32) {
    %c0_i32 = arith.constant 0 : i32
    %c0_i32_0 = arith.constant 0 : i32
    return %arg0, %c0_i32 : i32, i32
  }
  func.func @transform_1(%arg0: i32) -> (i32, i32) {
    %c0_i32 = arith.constant 0 : i32
    %c0_i32_0 = arith.constant 0 : i32
    %c0_i32_1 = arith.constant 0 : i32
    return %c0_i32, %c0_i32_0 : i32, i32
  }
  func.func @transform_2(%arg0: i32) -> (i32, i32) {
    %c0_i32 = arith.constant 0 : i32
    %c0_i32_0 = arith.constant 0 : i32
    return %arg0, %c0_i32 : i32, i32
  }
  func.func @transform_3(%arg0: i32) -> (i32, i32) {
    %c0_i32 = arith.constant 0 : i32
    %c0_i32_0 = arith.constant 0 : i32
    return %arg0, %c0_i32 : i32, i32
  }
  func.func @transform_4(%arg0: i32) -> (i32, i32) {
    %c0_i32 = arith.constant 0 : i32
    %c0_i32_0 = arith.constant 0 : i32
    return %arg0, %c0_i32 : i32, i32
  }
}

</mosaic_0001>

<bundles_post_ra>
// kernel: tpu_custom_call.1
= control target key start
LH: loop header
LB: loop body
LE: loop exit
PB: predicated region body
PF: predicated region fallthrough
CT: control target
= control target key end

     0   :  { %10 = vsyncpa [#allocation3], 0  ;;  %s993_s0 = inlined_call_operand.hbm [shape: f32[16,32], index: 0, kind: input, shape index: {}]   ;;  %s994_s1 = inlined_call_operand.hbm [shape: f32[32,96], index: 1, kind: input, shape index: {}]   ;;  %s995_s2 = inlined_call_operand.hbm [shape: f32[16,32], index: 2, kind: output, shape index: {0}]   ;;  %s996_s3 = inlined_call_operand.hbm [shape: f32[16,32], index: 3, kind: output, shape index: {1}]   ;;  %s997_s4 = inlined_call_operand.hbm [shape: f32[16,32], index: 4, kind: output, shape index: {2}]  }
   0x1   :  { %11 = vsyncpa [#allocation6], 0 }
   0x2   :  { %12 = vsyncpa [#allocation4], 0 }
   0x3   :  { %13 = vsyncpa [#allocation9], 0  ;;  %s873_s15 = smov [#allocation2]  }
   0x4   :  { %s19_s16 = sshll.u32 %s873_s15, 4  ;;  %s20_s16 = int_to_ptr.vmem [resolvable:$true] %s19_s16 }
   0x5   :  { %s773_s17 = scalar_lea.vmem %s20_s16, 256  ;;  %p778_p1 = scmp.lt.s32.totalorder %s20_s16, %s20_s16 }
   0x6   :  { %p774_p0 = scmp.ne.s32.totalorder %s20_s16, %s773_s17  ;;  %p779_p2 = scmp.lt.s32.totalorder %s773_s17, %s773_s17 }
   0x8   :  { %p780_p3 = por %p779_p2, %p778_p1 }
   0xa   :  { %p781_p4 = pnand %p780_p3, %p774_p0 }
   0xc   :  { %784 = shalt.err (!%p781_p4)
}
   0xd   :  { %s874_s18 = smov 128   ;;  %s875_s19 = smov 8  }
   0xe   :  { %25 = dma.hbm_to_vmem [thread:$0]  %s993_s0, 256, %s20_s16, [#allocation3], %s874_s18, %s874_s18, %s875_s19  }
   0xf   :  { %s876_s22 = smov [#allocation5]  }
  0x10   :  { %s31_s23 = sshll.u32 %s876_s22, 4  ;;  %s32_s23 = int_to_ptr.vmem [resolvable:$true] %s31_s23 }
  0x11   :  { %s793_s24 = scalar_lea.vmem %s32_s23, 512  ;;  %p798_p6 = scmp.lt.s32.totalorder %s32_s23, %s32_s23 }
  0x12   :  { %p794_p5 = scmp.ne.s32.totalorder %s32_s23, %s793_s24  ;;  %p799_p7 = scmp.lt.s32.totalorder %s793_s24, %s793_s24 }
  0x14   :  { %p800_p8 = por %p799_p7, %p798_p6 }
  0x16   :  { %p801_p9 = pnand %p800_p8, %p794_p5 }
  0x18   :  { %804 = shalt.err (!%p801_p9)
}
  0x19   :  { %37 = dma.hbm_to_vmem [thread:$0]  %s994_s1, 512, %s32_s23, [#allocation6], %s874_s18, %s874_s18, %s875_s19  }
  0x1a   :  { %865 = dma.done.wait [#allocation3], 256  }
  0x1b   :  { %866 = vsyncadd [#allocation3], 4294967040 }
  0x1c   :  { %867 = dma.done.wait [#allocation6], 512  }
  0x1d   :  { %868 = vsyncadd [#allocation6], 4294966784  ;;  %vm50_vm0 = vcmask 261120   ;;  %v49_v0 = vld [vmem:[#allocation5 + $0x18] sm:$0xff]  ;;  %v48_v1 = vld [vmem:[#allocation5 + $0x10] sm:$0xff]  ;;  %s877_s0 = smov [#allocation7]  }
  0x1e   :  { %v47_v2 = vld [vmem:[#allocation5 + $0x8] sm:$0xff]  ;;  %v919_v3 = vand.u32 4294901760, %v49_v0  ;;  %v921_v4 = vand.u32 4294901760, %v48_v1  ;;  %v46_v6 = vld [vmem:[#allocation5] sm:$0xff]  ;;  %v44_v7 = vld [vmem:[#allocation2] sm:$0xff]  ;;  %s610_s1 = sshll.u32 %s877_s0, 4  ;;  %s611_s1 = int_to_ptr.vmem [resolvable:$true] %s610_s1 }
  0x1f   :  { %v923_v5 = vand.u32 4294901760, %v47_v2  ;;  %v45_v8 = vld [vmem:[#allocation2 + $0x8] sm:$0xff]  ;;  %v925_v9 = vand.u32 4294901760, %v46_v6  ;;  %v52_v10 = vsel %vm50_vm0, %v44_v7, 0  ;;  %s878_s27 = smov 64   ;;  %s879_s28 = smov 96  }
  0x20   :  { %v55_v11 = vsel %vm50_vm0, %v45_v8, 0  ;;  %690 = vmatprep.subr.mxu0 %v919_v3  ;;  %v172_v12 = vsub.f32 %v49_v0, %v919_v3  ;;  %v931_v13 = vand.u32 4294901760, %v52_v10  ;;  %v179_v14 = vsub.f32 %v48_v1, %v921_v4  ;;  %s805_s29 = scalar_lea.vmem %s611_s1, 256  ;;  %p810_p11 = scmp.lt.s32.totalorder %s611_s1, %s611_s1 }
  0x21   :  { %v934_v15 = vand.u32 4294901760, %v55_v11  ;;  %691 = vmatpush3.msra.mxu0 %v919_v3  ;;  %v186_v16 = vsub.f32 %v47_v2, %v923_v5  ;;  %v193_v17 = vsub.f32 %v46_v6, %v925_v9  ;;  %p806_p10 = scmp.ne.s32.totalorder %s611_s1, %s805_s29  ;;  %p811_p12 = scmp.lt.s32.totalorder %s805_s29, %s805_s29 }
  0x22   :  { %692 = vmatprep.subr.mxu0 %v921_v4  ;;  %v173_v18 = vand.u32 4294901760, %v172_v12  ;;  %v127_v19 = vsub.f32 %v52_v10, %v931_v13  ;;  %v180_v20 = vand.u32 4294901760, %v179_v14  ;;  %709 = vmatprep.mubr.f32.mxu1 %v931_v13 }
  0x23   :  { %v137_v21 = vsub.f32 %v55_v11, %v934_v15  ;;  %693 = vmatpush3.msra.mxu0 %v921_v4  ;;  %v187_v22 = vand.u32 4294901760, %v186_v16  ;;  %v194_v23 = vand.u32 4294901760, %v193_v17  ;;  %p812_p13 = por %p811_p12, %p810_p11 }
  0x24   :  { %694 = vmatprep.subr.mxu0 %v923_v5  ;;  %v174_v24 = vsub.f32 %v172_v12, %v173_v18  ;;  %v128_v25 = vand.u32 4294901760, %v127_v19  ;;  %v181_v26 = vsub.f32 %v179_v14, %v180_v20 }
  0x25   :  { %v138_v27 = vand.u32 4294901760, %v137_v21  ;;  %695 = vmatpush3.msra.mxu0 %v923_v5  ;;  %v188_v28 = vsub.f32 %v186_v16, %v187_v22  ;;  %v195_v29 = vsub.f32 %v193_v17, %v194_v23  ;;  %p813_p0 = pnand %p812_p13, %p806_p10 }
  0x26   :  { %696 = vmatprep.subr.mxu0 %v925_v9  ;;  %v175_v30 = vand.u32 4294901760, %v174_v24  ;;  %v129_v31 = vsub.f32 %v127_v19, %v128_v25  ;;  %v182_v32 = vand.u32 4294901760, %v181_v26 }
  0x27   :  { %v139_v33 = vsub.f32 %v137_v21, %v138_v27  ;;  %697 = vmatpush3.msra.mxu0 %v925_v9  ;;  %v189_v36 = vand.u32 4294901760, %v188_v28  ;;  %v196_v37 = vand.u32 4294901760, %v195_v29 }
  0x28   :  { %701 = vmatprep.subr.mxu1 %v175_v30  ;;  %v130_v34 = vand.u32 4294901760, %v129_v31  ;;  %712 = vmatprep.subr.mxu0 %v172_v12 }
  0x29   :  { %v140_v35 = vand.u32 4294901760, %v139_v33  ;;  %702 = vmatpush3.msra.mxu1 %v175_v30 }
  0x2a   :  { %698 = vmatprep.mubr.f32.mxu0 %v130_v34  ;;  %703 = vmatprep.subr.mxu1 %v182_v32 }
  0x2b   :  { %699 = vmatmul.mubr.f32.vlgmr.msra.gmra.mxu0 %v140_v35  ;;  %704 = vmatpush3.msra.mxu1 %v182_v32 }
  0x2c   :  { %713 = vmatpush3.msra.mxu0 %v172_v12  ;;  %705 = vmatprep.subr.mxu1 %v189_v36 }
  0x2d   :  { %714 = vmatprep.subr.mxu0 %v179_v14  ;;  %706 = vmatpush3.msra.mxu1 %v189_v36 }
  0x2e   :  { %715 = vmatpush3.msra.mxu0 %v179_v14  ;;  %707 = vmatprep.subr.mxu1 %v196_v37 }
  0x2f   :  { %716 = vmatprep.subr.mxu0 %v186_v16  ;;  %708 = vmatpush3.msra.mxu1 %v196_v37 }
  0x30   :  { %717 = vmatpush3.msra.mxu0 %v186_v16  ;;  %710 = vmatmul.mubr.f32.vlgmr.msra.gmra.mxu1 %v934_v15 }
  0x31   :  { %718 = vmatprep.subr.mxu0 %v193_v17  ;;  %723 = vmatprep.subr.mxu1 %v919_v3 }
  0x32   :  { %719 = vmatpush3.msra.mxu0 %v193_v17  ;;  %720 = vmatprep.mubr.f32.mxu0 %v127_v19 }
  0x33   :  { %724 = vmatpush3.msra.mxu1 %v919_v3  ;;  %721 = vmatmul.mubr.f32.vlgmr.msra.gmra.mxu0 %v137_v21 }
  0x34   :  { %725 = vmatprep.subr.mxu1 %v921_v4  ;;  %734 = vmatprep.subr.mxu0 %v173_v18 }
  0x35   :  { %726 = vmatpush3.msra.mxu1 %v921_v4  ;;  %735 = vmatpush3.msra.mxu0 %v173_v18 }
  0x36   :  { %727 = vmatprep.subr.mxu1 %v923_v5  ;;  %736 = vmatprep.subr.mxu0 %v180_v20 }
  0x37   :  { %728 = vmatpush3.msra.mxu1 %v923_v5  ;;  %737 = vmatpush3.msra.mxu0 %v180_v20 }
  0x38   :  { %729 = vmatprep.subr.mxu1 %v925_v9  ;;  %738 = vmatprep.subr.mxu0 %v187_v22 }
  0x39   :  { %730 = vmatpush3.msra.mxu1 %v925_v9  ;;  %731 = vmatprep.mubr.f32.mxu1 %v128_v25 }
  0x3a   :  { %739 = vmatpush3.msra.mxu0 %v187_v22  ;;  %732 = vmatmul.mubr.f32.vlgmr.msra.gmra.mxu1 %v138_v27 }
  0x3b   :  { %740 = vmatprep.subr.mxu0 %v194_v23  ;;  %745 = vmatprep.subr.mxu1 %v919_v3 }
  0x3c   :  { %741 = vmatpush3.msra.mxu0 %v194_v23  ;;  %742 = vmatprep.mubr.f32.mxu0 %v931_v13 }
  0x3d   :  { %746 = vmatpush3.msra.mxu1 %v919_v3  ;;  %743 = vmatmul.mubr.f32.vlgmr.msra.gmra.mxu0 %v934_v15 }
  0x3e   :  { %747 = vmatprep.subr.mxu1 %v921_v4  ;;  %753 = vmatprep.mubr.f32.mxu1 %v931_v13 }
  0x3f   :  { %748 = vmatpush3.msra.mxu1 %v921_v4 }
  0x40   :  { %749 = vmatprep.subr.mxu1 %v923_v5 }
  0x41   :  { %750 = vmatpush3.msra.mxu1 %v923_v5 }
  0x42   :  { %751 = vmatprep.subr.mxu1 %v925_v9 }
  0x43   :  { %752 = vmatpush3.msra.mxu1 %v925_v9 }
  0x44   :  { %754 = vmatmul.mubr.f32.vlgmr.msra.gmra.mxu1 %v934_v15 }
  0xeb   :  { %v700_v38 = vpop.f32.mrf.mxu0 }
  0xed   :  { %v132_v39 = vpop.f32.mrf.mxu0 }
  0xf0   :  { %v711_v40 = vpop.f32.mrf.mxu1 }
  0xf1   :  { %v240_v43 = vadd.f32 %v711_v40, %v700_v38 }
  0xf2   :  { %v233_v41 = vpop.f32.mrf.mxu1 }
  0xf3   :  { %v722_v42 = vpop.f32.mrf.mxu0  ;;  %v234_v45 = vadd.f32 %v233_v41, %v132_v39 }
  0xf4   :  { %v327_v47 = vadd.f32 %v722_v42, %v240_v43 }
  0xf5   :  { %v319_v46 = vpop.f32.mrf.mxu0 }
  0xf6   :  { %v320_v50 = vadd.f32 %v319_v46, %v234_v45 }
  0xfa   :  { %v733_v44 = vpop.f32.mrf.mxu1 }
  0xfb   :  { %v412_v51 = vadd.f32 %v733_v44, %v327_v47 }
  0xfc   :  { %v403_v48 = vpop.f32.mrf.mxu1 }
  0xfd   :  { %v744_v49 = vpop.f32.mrf.mxu0  ;;  %v404_v52 = vadd.f32 %v403_v48, %v320_v50 }
  0xfe   :  { %v501_v54 = vadd.f32 %v744_v49, %v412_v51 }
  0xff   :  { %v494_v53 = vpop.f32.mrf.mxu0 }
 0x100   :  { %v495_v56 = vadd.f32 %v494_v53, %v404_v52 }
 0x104   :  { %v755_v55 = vpop.f32.mrf.mxu1 }
 0x105   :  { %v582_v57 = vadd.f32 %v755_v55, %v501_v54 }
 0x106   :  { %v575_v58 = vpop.f32.mrf.mxu1 }
 0x107   :  { %586 = vst.msk [vmem:[#allocation7 + $0x8] sm:$0xff] %vm50_vm0, %v582_v57  ;;  %v576_v59 = vadd.f32 %v575_v58, %v495_v56 }
 0x109   :  { %585 = vst.msk [vmem:[#allocation7] sm:$0xff] %vm50_vm0, %v576_v59  ;;  %597 = vrot.lane.b32.xlu1 %v576_v59, %s878_s27  ;;  %589 = vrot.lane.b32.xlu0 %v576_v59, %s879_s28 }
 0x10a   :  { %816 = shalt.err (!%p813_p0)
}
 0x10b   :  { %616 = dma.vmem_to_hbm [thread:$0]  %s611_s1, 256, %s995_s2, [#allocation4], %s874_s18, %s874_s18, %s875_s19  }
 0x10c   :  { %s880_s6 = smov [#allocation8]   ;;  %s881_s8 = smov [#allocation10]  }
 0x10d   :  { %599 = vrot.lane.b32.xlu1 %v582_v57, %s878_s27  ;;  %591 = vrot.lane.b32.xlu0 %v582_v57, %s879_s28  ;;  %s622_s7 = sshll.u32 %s880_s6, 4  ;;  %s634_s9 = sshll.u32 %s881_s8, 4  ;;  %s623_s7 = int_to_ptr.vmem [resolvable:$true] %s622_s7  ;;  %s635_s9 = int_to_ptr.vmem [resolvable:$true] %s634_s9 }
 0x10e   :  { %s825_s2 = scalar_lea.vmem %s623_s7, 256  ;;  %p830_p2 = scmp.lt.s32.totalorder %s623_s7, %s623_s7 }
 0x10f   :  { %p826_p1 = scmp.ne.s32.totalorder %s623_s7, %s825_s2  ;;  %p831_p3 = scmp.lt.s32.totalorder %s825_s2, %s825_s2 }
 0x111   :  { %p832_p4 = por %p831_p3, %p830_p2 }
 0x113   :  { %p833_p5 = pnand %p832_p4, %p826_p1 }
 0x17b   :  { %v598_v60 = vpop.permute.xlu1 %597  ;;  %v590_v61 = vpop.permute.xlu0 %589 }
 0x17c   :  { %603 = vst.msk [vmem:[#allocation10] sm:$0xff] %vm50_vm0, %v598_v60  ;;  %595 = vst.msk [vmem:[#allocation8] sm:$0xff] %vm50_vm0, %v590_v61 }
 0x17f   :  { %v600_v62 = vpop.permute.xlu1 %599  ;;  %v592_v63 = vpop.permute.xlu0 %591 }
 0x180   :  { %604 = vst.msk [vmem:[#allocation10 + $0x8] sm:$0xff] %vm50_vm0, %v600_v62  ;;  %596 = vst.msk [vmem:[#allocation8 + $0x8] sm:$0xff] %vm50_vm0, %v592_v63 }
 0x181   :  { %836 = shalt.err (!%p833_p5)
}
 0x182   :  { %628 = dma.vmem_to_hbm [thread:$0]  %s623_s7, 256, %s996_s3, [#allocation9], %s874_s18, %s874_s18, %s875_s19  }
 0x183   :  { %s845_s12 = scalar_lea.vmem %s635_s9, 256  ;;  %p850_p7 = scmp.lt.s32.totalorder %s635_s9, %s635_s9 }
 0x184   :  { %p846_p6 = scmp.ne.s32.totalorder %s635_s9, %s845_s12  ;;  %p851_p8 = scmp.lt.s32.totalorder %s845_s12, %s845_s12 }
 0x186   :  { %p852_p9 = por %p851_p8, %p850_p7 }
 0x188   :  { %p853_p10 = pnand %p852_p9, %p846_p6 }
 0x18a   :  { %856 = shalt.err (!%p853_p10)
}
 0x18b   :  { %640 = dma.vmem_to_hbm [thread:$0]  %s635_s9, 256, %s997_s4, [#allocation9], %s874_s18, %s874_s18, %s875_s19  }
 0x18c   :  { %869 = dma.done.wait [#allocation4], 256  }
 0x18d   :  { %870 = vsyncadd [#allocation4], 4294967040 }
 0x18e   :  { %871 = dma.done.wait [#allocation9], 512  }
 0x18f   :  { %872 = vsyncadd [#allocation9], 4294966784 }
 0x190   :  { %650 = vsyncpa [#allocation3], 1 }
 0x191   :  { %651 = vsyncpa [#allocation6], 1 }
 0x192   :  { %652 = vsyncpa [#allocation4], 1 }
 0x193   :  { %653 = vsyncpa [#allocation9], 1 }

</bundles_post_ra>
